<compile_context>
chip_gen: v5e
topology: v5e:2x2
jax: 0.10.0
libtpu: 0.0.40
codegen_flags: <defaults>
</compile_context>

<pallas_src>
import functools
import math

import jax
import jax.numpy as jnp
from jax.experimental import pallas as pl
from jax.experimental.pallas import tpu as pltpu

_BLOCK_M = 512                 # rows per M tile (multiple of 8)
_BLOCK_N = 2048                # cols per N tile for plain matmuls (multiple of 128)
_VMEM_FLOOR = 8 * 1024 * 1024
_VMEM_CAP = 40 * 1024 * 1024   # headroom below v7x's 64 MiB physical VMEM


def _nbytes(shape, dtype):
    return int(math.prod(shape)) * jnp.dtype(dtype).itemsize


def _mosaic_params(grid_rank, block_bytes):
    # 2x for double buffering + margin for Mosaic internal scratch.
    limit = int(min(_VMEM_CAP, max(_VMEM_FLOOR, 2 * block_bytes + (4 << 20))))
    return pltpu.CompilerParams(
        dimension_semantics=("parallel",) * grid_rank,
        vmem_limit_bytes=limit)


def _m_tiling(M):
    if M <= _BLOCK_M:
        return M, 1
    return _BLOCK_M, pl.cdiv(M, _BLOCK_M)


def _n_tiling(N):
    if N <= _BLOCK_N:
        return N, 1
    return _BLOCK_N, pl.cdiv(N, _BLOCK_N)


# ----------------------------------------------------------------------------
# Pallas kernels
# ----------------------------------------------------------------------------
def _mm_kernel(x_ref, w_ref, b_ref, o_ref, *, relu):
    acc = jnp.dot(x_ref[...], w_ref[...], preferred_element_type=jnp.float32)
    acc = acc + b_ref[...]
    if relu:
        acc = jnp.maximum(acc, 0.0)
    o_ref[...] = acc.astype(o_ref.dtype)


def _conv3_ds_kernel(x_ref, w_ref, b_ref, id_ref, dsw_ref, dsb_ref, o_ref):
    # conv3+BN, fused 1x1 downsample+BN residual, add, ReLU.  bf16 in, f32 acc.
    acc = jnp.dot(x_ref[...], w_ref[...], preferred_element_type=jnp.float32)
    acc = acc + b_ref[...]
    res = jnp.dot(id_ref[...], dsw_ref[...], preferred_element_type=jnp.float32)
    acc = jnp.maximum(acc + res + dsb_ref[...], 0.0)
    o_ref[...] = acc.astype(o_ref.dtype)


def _conv3_ds_proj_kernel(x_ref, w_ref, b_ref, id_ref, dsw_ref, dsb_ref,
                          pw_ref, o_ref, po_ref):
    acc = jnp.dot(x_ref[...], w_ref[...], preferred_element_type=jnp.float32)
    acc = acc + b_ref[...]
    res = jnp.dot(id_ref[...], dsw_ref[...], preferred_element_type=jnp.float32)
    acc = jnp.maximum(acc + res + dsb_ref[...], 0.0)
    o_ref[...] = acc.astype(o_ref.dtype)
    # 1x1 repeating-eye ConvProjection fused as a second matmul (128-lane-dense
    # padded output -> unmasked stores).
    po_ref[...] = jnp.dot(acc.astype(pw_ref.dtype), pw_ref[...],
                          preferred_element_type=jnp.float32).astype(po_ref.dtype)


def _attnpool_kernel(qkv_ref, o_ref, *, num_heads, scale):
    # One batch element per grid step.  qkv: [S, 3E] bf16 (q/k/v concatenated on
    # lanes, heads are contiguous dh chunks); single query = token 0 (mean token).
    qkv = qkv_ref[0]                                        # [S, 3E]
    S, E3 = qkv.shape
    E = E3 // 3
    dh = E // num_heads
    q = qkv[0:1, 0:E].astype(jnp.float32)                   # [1, E]
    k = qkv[:, E:2 * E].astype(jnp.float32)                 # [S, E]
    v = qkv[:, 2 * E:3 * E].astype(jnp.float32)             # [S, E]
    # Head-segment indicator matrices (iota) keep E lane-dense: no per-head
    # python loop, no dh-wide slices, no concatenate.
    seg = (jax.lax.broadcasted_iota(jnp.int32, (E, num_heads), 0) // dh ==
           jax.lax.broadcasted_iota(jnp.int32, (E, num_heads), 1)
           ).astype(jnp.float32)                            # [E, H]
    seg_t = (jax.lax.broadcasted_iota(jnp.int32, (num_heads, E), 1) // dh ==
             jax.lax.broadcasted_iota(jnp.int32, (num_heads, E), 0)
             ).astype(jnp.float32)                          # [H, E]
    s = jnp.dot(q * k, seg, preferred_element_type=jnp.float32) * scale   # [S, H]
    s = s - jnp.max(s, axis=0, keepdims=True)               # softmax over S (sublanes)
    p = jnp.exp(s)
    p = p * pl.reciprocal(jnp.sum(p, axis=0, keepdims=True), approx=True)
    p_full = jnp.dot(p, seg_t, preferred_element_type=jnp.float32)        # [S, E]
    o_ref[0] = jnp.sum(p_full * v, axis=0, keepdims=True).astype(o_ref.dtype)


# ----------------------------------------------------------------------------
# Pallas wrappers
# ----------------------------------------------------------------------------
def matmul_bias(x, w, bias, *, relu=False, out_dtype=jnp.bfloat16):
    """y = maybe_relu(x @ w + bias), tiled over M and (for wide layers) N."""
    M, K = x.shape
    N = w.shape[1]
    tm, gm = _m_tiling(M)
    tn, gn = _n_tiling(N)

    xb = x.astype(jnp.bfloat16)
    wb = w.astype(jnp.bfloat16)
    b2 = bias.reshape(1, N).astype(jnp.float32)

    block_bytes = (_nbytes((tm, K), jnp.bfloat16) + _nbytes((K, tn), jnp.bfloat16)
                   + _nbytes((1, tn), jnp.float32) + _nbytes((tm, tn), out_dtype))

    return pl.pallas_call(
        functools.partial(_mm_kernel, relu=relu),
        grid=(gm, gn),
        in_specs=[pl.BlockSpec((tm, K), lambda i, j: (i, 0)),
                  pl.BlockSpec((K, tn), lambda i, j: (0, j)),
                  pl.BlockSpec((1, tn), lambda i, j: (0, j))],
        out_specs=pl.BlockSpec((tm, tn), lambda i, j: (i, j)),
        out_shape=jax.ShapeDtypeStruct((M, N), out_dtype),
        compiler_params=_mosaic_params(2, block_bytes),
    )(xb, wb, b2)


def fused_conv3_ds(x2d, id2d, conv3, ds, proj_w):
    """maybe_proj(relu(x @ w3 + b3 + id @ ds_w + ds_b)); intermediates bf16."""
    w, b = conv3
    dsw, dsb = ds
    M, K = x2d.shape
    Kd = id2d.shape[1]
    N = w.shape[1]
    tm, gm = _m_tiling(M)

    xb = x2d.astype(jnp.bfloat16)
    idb = id2d.astype(jnp.bfloat16)
    b2 = b.reshape(1, N).astype(jnp.float32)
    dsb2 = dsb.reshape(1, N).astype(jnp.float32)

    in_specs = [pl.BlockSpec((tm, K), lambda i: (i, 0)),
                pl.BlockSpec((K, N), lambda i: (0, 0)),
                pl.BlockSpec((1, N), lambda i: (0, 0)),
                pl.BlockSpec((tm, Kd), lambda i: (i, 0)),
                pl.BlockSpec((Kd, N), lambda i: (0, 0)),
                pl.BlockSpec((1, N), lambda i: (0, 0))]
    operands = [xb, w, b2, idb, dsw, dsb2]
    block_bytes = (_nbytes((tm, K), jnp.bfloat16) + _nbytes((K, N), jnp.bfloat16)
                   + _nbytes((tm, Kd), jnp.bfloat16) + _nbytes((Kd, N), jnp.bfloat16)
                   + 2 * _nbytes((1, N), jnp.float32) + _nbytes((tm, N), jnp.bfloat16))

    if proj_w is not None:
        P = proj_w.shape[1]  # padded to a multiple of 128 offline
        in_specs.append(pl.BlockSpec((N, P), lambda i: (0, 0)))
        operands.append(proj_w)
        block_bytes += _nbytes((N, P), jnp.bfloat16) + _nbytes((tm, P), jnp.float32)
        out_shape = (jax.ShapeDtypeStruct((M, N), jnp.bfloat16),
                     jax.ShapeDtypeStruct((M, P), jnp.float32))
        out_specs = (pl.BlockSpec((tm, N), lambda i: (i, 0)),
                     pl.BlockSpec((tm, P), lambda i: (i, 0)))
        kernel = _conv3_ds_proj_kernel
    else:
        out_shape = jax.ShapeDtypeStruct((M, N), jnp.bfloat16)
        out_specs = pl.BlockSpec((tm, N), lambda i: (i, 0))
        kernel = _conv3_ds_kernel

    res = pl.pallas_call(
        kernel, grid=(gm,),
        in_specs=in_specs, out_specs=out_specs, out_shape=out_shape,
        compiler_params=_mosaic_params(1, block_bytes),
    )(*operands)

    if proj_w is not None:
        return res[0], res[1]
    return res, None


def attention_pool_core(qkv, num_heads):
    """qkv: [B, S, 3E] bf16 (q/k/v concatenated on lanes) -> [B, E] f32."""
    B, S, E3 = qkv.shape
    E = E3 // 3
    dh = E // num_heads
    scale = 1.0 / math.sqrt(dh)
    block_bytes = _nbytes((1, S, E3), jnp.bfloat16) + _nbytes((1, 1, E), jnp.float32)
    out = pl.pallas_call(
        functools.partial(_attnpool_kernel, num_heads=num_heads, scale=scale),
        grid=(B,),
        in_specs=[pl.BlockSpec((1, S, E3), lambda b: (b, 0, 0))],
        out_specs=pl.BlockSpec((1, 1, E), lambda b: (b, 0, 0)),
        out_shape=jax.ShapeDtypeStruct((B, 1, E), jnp.float32),
        compiler_params=_mosaic_params(1, block_bytes),
    )(qkv.astype(jnp.bfloat16))
    return out.reshape(B, E)


# ----------------------------------------------------------------------------
# Conv / pooling glue (patch extraction + reshapes in JAX; matmuls in Pallas)
# ----------------------------------------------------------------------------
def im2col(x, kh, kw, stride, pad):
    # TODO(synk): at real CLIP scale, fold this gather into the conv kernel's
    # index_map (extra tap grid axis) instead of materializing a kh*kw slab.
    x = x.astype(jnp.bfloat16)
    if pad:
        x = jnp.pad(x, ((0, 0), (pad, pad), (pad, pad), (0, 0)))
    B, H, W, C = x.shape
    oh = (H - kh) // stride + 1
    ow = (W - kw) // stride + 1
    cols = []
    for i in range(kh):
        for j in range(kw):
            cols.append(x[:, i:i + stride * oh:stride, j:j + stride * ow:stride, :])
    cols = jnp.concatenate(cols, axis=-1)              # [B, oh, ow, kh*kw*C]
    return cols.reshape(B * oh * ow, kh * kw * C), (B, oh, ow)


def conv_bn(x, folded, *, stride=1, pad=0, relu=True):
    """x: NHWC.  `folded` = (w2 [kh*kw*Cin, Cout] bf16 with BN folded, bias f32)."""
    w2, bias = folded
    C = x.shape[-1]
    k = int(round(math.sqrt(w2.shape[0] // C)))
    cols, (B, oh, ow) = im2col(x, k, k, stride, pad)
    y = matmul_bias(cols, w2, bias, relu=relu)         # bf16 activations
    return y.reshape(B, oh, ow, -1)


def avgpool2x2(x):
    # TODO(synk): could be folded into the following conv's gather.
    B, H, W, C = x.shape
    return x.reshape(B, H // 2, 2, W // 2, 2, C).mean(axis=(2, 4))


def bottleneck(x, p, stride):
    out = conv_bn(x, p['conv1'], relu=True)                       # 1x1 + BN + ReLU
    out = conv_bn(out, p['conv2'], pad=1, relu=True)              # 3x3 + BN + ReLU
    if stride > 1:
        out = avgpool2x2(out)
        identity = avgpool2x2(x)
    else:
        identity = x
    B, oh, ow, planes = out.shape
    M = B * oh * ow
    # conv3+BN fused with the 1x1 downsample+BN residual, add, ReLU and the
    # optional repeating-eye token projection -- one kernel, bf16 HBM traffic.
    y, ptoks = fused_conv3_ds(out.reshape(M, planes),
                              identity.reshape(M, -1),
                              p['conv3'], p['ds'], p.get('proj'))
    y = y.reshape(B, oh, ow, -1)
    if ptoks is not None:
        ptoks = ptoks.reshape(B, oh * ow, -1)
    return y, ptoks


# ----------------------------------------------------------------------------
# Parameter construction (deterministic, synthetic) and inference folding
# ----------------------------------------------------------------------------
def repeating_eye(in_channels, out_channels):
    reps = in_channels // out_channels
    return jnp.tile(jnp.eye(out_channels, dtype=jnp.float32), (1, reps))   # [out, in]


def init_conv(key, cout, cin, k):
    fan_in = cin * k * k
    return jax.random.normal(key, (cout, cin, k, k), jnp.float32) / math.sqrt(fan_in)


def init_bn(key, c):
    k1, k2 = jax.random.split(key)
    gamma = 1.0 + 0.1 * jax.random.normal(k1, (c,), jnp.float32)
    beta = 0.1 * jax.random.normal(k2, (c,), jnp.float32)
    return (gamma, beta, jnp.zeros((c,), jnp.float32), jnp.ones((c,), jnp.float32), 1e-5)


def build_params(key, width, out_channels, attn_output_dim, input_resolution):
    keys = iter(jax.random.split(key, 64))
    p = {}
    # CLIP ModifiedResNet stem (3 convs).
    p['conv1'] = init_conv(next(keys), width // 2, 3, 3)
    p['bn1'] = init_bn(next(keys), width // 2)
    p['conv2'] = init_conv(next(keys), width // 2, width // 2, 3)
    p['bn2'] = init_bn(next(keys), width // 2)
    p['conv3'] = init_conv(next(keys), width, width // 2, 3)
    p['bn3'] = init_bn(next(keys), width)
    # Residual stages (scaled: one Bottleneck per stage).
    inplanes = width
    for i, planes in enumerate([width, width * 2, width * 4, width * 8], start=1):
        lp = {}
        lp['conv1'] = init_conv(next(keys), planes, inplanes, 1)
        lp['bn1'] = init_bn(next(keys), planes)
        lp['conv2'] = init_conv(next(keys), planes, planes, 3)
        lp['bn2'] = init_bn(next(keys), planes)
        lp['conv3'] = init_conv(next(keys), planes * 4, planes, 1)
        lp['bn3'] = init_bn(next(keys), planes * 4)
        lp['ds_conv'] = init_conv(next(keys), planes * 4, inplanes, 1)
        lp['ds_bn'] = init_bn(next(keys), planes * 4)
        p[f'layer{i}'] = lp
        inplanes = planes * 4
    # AttentionPool2d.
    embed_dim = width * 32
    spacial = input_resolution // 32
    std = embed_dim ** -0.5
    ap = {'pos_emb': std * jax.random.normal(next(keys),
                                             (spacial * spacial + 1, embed_dim), jnp.float32)}
    for name in ('q', 'k', 'v'):
        ap[f'{name}_w'] = std * jax.random.normal(next(keys), (embed_dim, embed_dim), jnp.float32)
        ap[f'{name}_b'] = jnp.zeros((embed_dim,), jnp.float32)
    ap['c_w'] = std * jax.random.normal(next(keys), (attn_output_dim, embed_dim), jnp.float32)
    ap['c_b'] = jnp.zeros((attn_output_dim,), jnp.float32)
    p['attnpool'] = ap
    # ImageFeatureExtractor projections (identity / repeating_eye init).
    top_channel = width * 32
    for ii in (2, 3, 4):
        in_ch = top_channel // (2 ** (4 - ii))
        p[f'proj_{ii}'] = repeating_eye(in_ch, out_channels).T        # [in_ch, out]
    p['proj_attnpool'] = repeating_eye(attn_output_dim, out_channels)  # [out, in]
    return p


def fold_conv_bn(w, bn):
    """PyTorch conv weight [Cout,Cin,kh,kw] + BN -> (w2 [kh*kw*Cin,Cout] bf16, bias f32)."""
    Cout, Cin, kh, kw = w.shape
    w2 = jnp.transpose(w, (2, 3, 1, 0)).reshape(kh * kw * Cin, Cout)
    gamma, beta, mean, var, eps = bn
    scale = gamma / jnp.sqrt(var + eps)
    bias = beta - mean * scale
    return (w2 * scale[None, :]).astype(jnp.bfloat16), bias.astype(jnp.float32)


def _pad_cols(a, mult=128):
    """Zero-pad the last dim up to a multiple of `mult` (lane-dense stores)."""
    n = a.shape[-1]
    pad = (-n) % mult
    if pad == 0:
        return a
    return jnp.pad(a, [(0, 0)] * (a.ndim - 1) + [(0, pad)])


def prepare_params(raw, out_features):
    """Hoist all weight transposes / BN folding / weight fusions / padding out of the forward."""
    p = {'stem': [fold_conv_bn(raw['conv1'], raw['bn1']),
                  fold_conv_bn(raw['conv2'], raw['bn2']),
                  fold_conv_bn(raw['conv3'], raw['bn3'])]}
    for i in (1, 2, 3, 4):
        lr = raw[f'layer{i}']
        lp = {'conv1': fold_conv_bn(lr['conv1'], lr['bn1']),
              'conv2': fold_conv_bn(lr['conv2'], lr['bn2']),
              'conv3': fold_conv_bn(lr['conv3'], lr['bn3']),
              'ds': fold_conv_bn(lr['ds_conv'], lr['ds_bn'])}
        if i in out_features and f'proj_{i}' in raw:
            # [C_layer, out_ch] padded to 128 lanes (sliced back outside the kernel).
            lp['proj'] = _pad_cols(raw[f'proj_{i}']).astype(jnp.bfloat16)
        p[f'layer{i}'] = lp
    ap = raw['attnpool']
    qkv_w = jnp.concatenate([ap['q_w'].T, ap['k_w'].T, ap['v_w'].T], axis=1)   # [E, 3E]
    qkv_b = jnp.concatenate([ap['q_b'], ap['k_b'], ap['v_b']])                 # [3E]
    # Fold c_proj and the repeating-eye attnpool projection into one matmul, pad lanes.
    out_w = ap['c_w'].T @ raw['proj_attnpool'].T                               # [E, out_ch]
    out_b = ap['c_b'] @ raw['proj_attnpool'].T                                 # [out_ch]
    p['attnpool'] = {'pos_emb': ap['pos_emb'],
                     'qkv_w': qkv_w.astype(jnp.bfloat16),
                     'qkv_b': qkv_b.astype(jnp.float32),
                     'out_w': _pad_cols(out_w).astype(jnp.bfloat16),
                     'out_b': _pad_cols(out_b).astype(jnp.float32),
                     'out_cols': int(out_b.shape[0])}
    return p


# ----------------------------------------------------------------------------
# ImageFeatureExtractor forward
# ----------------------------------------------------------------------------
def attnpool_forward(ap, x_nhwc):
    B, H, W, C = x_nhwc.shape
    num_heads = C // 64
    tokens = x_nhwc.reshape(B, H * W, C).astype(jnp.float32)
    x = jnp.concatenate([jnp.mean(tokens, axis=1, keepdims=True), tokens], axis=1)  # [B,S,C]
    x = x + ap['pos_emb'][None]
    S = x.shape[1]
    qkv = matmul_bias(x.reshape(B * S, C), ap['qkv_w'], ap['qkv_b'])     # [B*S, 3C] bf16
    attn = attention_pool_core(qkv.reshape(B, S, 3 * C), num_heads)      # [B, C] f32
    # c_proj + repeating-eye attnpool projection (folded offline, lane-padded)
    out = matmul_bias(attn, ap['out_w'], ap['out_b'], out_dtype=jnp.float32)
    return out[:, :ap['out_cols']]                                       # [B, out_channels]


def image_feature_extractor_forward(params, imgs_nchw, out_features, out_channels):
    # layout: input is NCHW (PyTorch convention); converted once to NHWC here.
    x = jnp.transpose(imgs_nchw, (0, 2, 3, 1)).astype(jnp.float32)

    # stem: conv/bn/relu x3, then avgpool(2)
    s1, s2, s3 = params['stem']
    x = conv_bn(x, s1, stride=2, pad=1, relu=True)
    x = conv_bn(x, s2, stride=1, pad=1, relu=True)
    x = conv_bn(x, s3, stride=1, pad=1, relu=True)
    x = avgpool2x2(x)

    out = {}
    if 'stem' in out_features:
        out['stem'] = jnp.transpose(x, (0, 3, 1, 2)).astype(jnp.float32)

    proj_tokens = []
    for ind in (1, 2, 3, 4):
        stride = 1 if ind == 1 else 2
        x, ptoks = bottleneck(x, params[f'layer{ind}'], stride)
        if ind in out_features:
            out[ind] = jnp.transpose(x, (0, 3, 1, 2)).astype(jnp.float32)   # NCHW
        if ptoks is not None:
            proj_tokens.append(ptoks[:, :, :out_channels])                  # [B, HW, out_ch]

    if 'attnpool' in out_features:
        out['attnpool'] = attnpool_forward(params['attnpool'], x)   # [B, out_channels]

    projs = list(proj_tokens)
    if 'attnpool' in out:
        projs.append(out['attnpool'][:, None, :])
    out['projections'] = jnp.concatenate(projs, axis=1)
    return out


# ----------------------------------------------------------------------------
if __name__ == "__main__":
    B = 2
    IMG_RES = 32          # scaled-down (real CLIP RN50 uses 224)
    WIDTH = 8             # scaled-down (real CLIP RN50 uses 64)
    OUT_CHANNELS = 32
    ATTN_OUTPUT_DIM = 64  # scaled-down (real CLIP RN50 attnpool output is 1024)
    OUT_FEATURES = (2, 3, 4, 'attnpool')

    raw_params = build_params(jax.random.PRNGKey(0), WIDTH, OUT_CHANNELS,
                              ATTN_OUTPUT_DIM, IMG_RES)
    params = prepare_params(raw_params, OUT_FEATURES)   # BN/transpose/fusion hoisted here
    imgs = jax.random.normal(jax.random.PRNGKey(0), (B, 3, IMG_RES, IMG_RES), jnp.float32)

    out = image_feature_extractor_forward(params, imgs, OUT_FEATURES, OUT_CHANNELS)
    jax.block_until_ready(list(out.values()))

    assert out[2].shape == (B, WIDTH * 8, 4, 4)
    assert out[3].shape == (B, WIDTH * 16, 2, 2)
    assert out[4].shape == (B, WIDTH * 32, 1, 1)
    assert out['attnpool'].shape == (B, OUT_CHANNELS)
    assert out['projections'].shape == (B, 16 + 4 + 1 + 1, OUT_CHANNELS)
    assert all(bool(jnp.all(jnp.isfinite(v))) for v in out.values())
    print("KERNEL_OK")
</pallas_src>

<mosaic_0001>
module attributes {stable_mosaic.version = 11 : i64} {
  func.func @_mm_kernel(%arg0: i32, %arg1: i32, %arg2: memref<512x27xbf16, #tpu.memory_space<vmem>>, %arg3: memref<27x4xbf16, #tpu.memory_space<vmem>>, %arg4: memref<1x4xf32, #tpu.memory_space<vmem>>, %arg5: memref<512x4xbf16, #tpu.memory_space<vmem>>) attributes {dimension_semantics = [#tpu.dimension_semantics<parallel>, #tpu.dimension_semantics<parallel>], iteration_bounds = array<i64: 1, 1>, scalar_prefetch = 0 : i64, scratch_operands = 0 : i64, tpu.core_type = #tpu.core_type<tc>, window_params = [{transform_indices = @transform_0, window_bounds = array<i64: 512, 27>}, {transform_indices = @transform_1, window_bounds = array<i64: 27, 4>}, {transform_indices = @transform_2, window_bounds = array<i64: 1, 4>}, {transform_indices = @transform_3, window_bounds = array<i64: 512, 4>}]} {
    %c0 = arith.constant 0 : index
    %c0_0 = arith.constant 0 : index
    %0 = vector.load %arg2[%c0, %c0_0] : memref<512x27xbf16, #tpu.memory_space<vmem>>, vector<512x27xbf16>
    %c0_1 = arith.constant 0 : index
    %c0_2 = arith.constant 0 : index
    %1 = vector.load %arg3[%c0_1, %c0_2] : memref<27x4xbf16, #tpu.memory_space<vmem>>, vector<27x4xbf16>
    %cst = arith.constant dense<0.000000e+00> : vector<512x4xf32>
    %2 = tpu.matmul %0, %1, %cst {dimension_numbers = #tpu.dot_dimension_numbers<[1], [0], [0], [1], [0, 0, 1, 1], [], []>} : vector<512x27xbf16>, vector<27x4xbf16>, vector<512x4xf32> -> vector<512x4xf32>
    %c0_3 = arith.constant 0 : index
    %c0_4 = arith.constant 0 : index
    %3 = vector.load %arg4[%c0_3, %c0_4] : memref<1x4xf32, #tpu.memory_space<vmem>>, vector<1x4xf32>
    %4 = vector.broadcast %3 : vector<1x4xf32> to vector<512x4xf32>
    %5 = arith.addf %2, %4 : vector<512x4xf32>
    %cst_5 = arith.constant 0.000000e+00 : f32
    %6 = vector.broadcast %cst_5 : f32 to vector<512x4xf32>
    %7 = arith.maximumf %5, %6 : vector<512x4xf32>
    %8 = arith.truncf %7 : vector<512x4xf32> to vector<512x4xbf16>
    %c0_6 = arith.constant 0 : index
    %c0_7 = arith.constant 0 : index
    %9 = vector.load %arg5[%c0_6, %c0_7] : memref<512x4xbf16, #tpu.memory_space<vmem>>, vector<512x4xbf16>
    tpu.vector_store %arg5[%c0_6, %c0_7], %8 {strides = array<i32>} : memref<512x4xbf16, #tpu.memory_space<vmem>>, vector<512x4xbf16>,
    return
  }
  func.func @transform_0(%arg0: i32, %arg1: i32) -> (i32, i32) {
    %c0_i32 = arith.constant 0 : i32
    %c0_i32_0 = arith.constant 0 : i32
    return %arg0, %c0_i32 : i32, i32
  }
  func.func @transform_1(%arg0: i32, %arg1: i32) -> (i32, i32) {
    %c0_i32 = arith.constant 0 : i32
    %c0_i32_0 = arith.constant 0 : i32
    return %c0_i32, %arg1 : i32, i32
  }
  func.func @transform_2(%arg0: i32, %arg1: i32) -> (i32, i32) {
    %c0_i32 = arith.constant 0 : i32
    %c0_i32_0 = arith.constant 0 : i32
    return %c0_i32, %arg1 : i32, i32
  }
  func.func @transform_3(%arg0: i32, %arg1: i32) -> (i32, i32) {
    %c0_i32 = arith.constant 0 : i32
    return %arg0, %arg1 : i32, i32
  }
}

</mosaic_0001>

<bundles_post_ra>
// kernel: tpu_custom_call.1
= control target key start
LH: loop header
LB: loop body
LE: loop exit
PB: predicated region body
PF: predicated region fallthrough
CT: control target
= control target key end

     0   :  { %vm355_vm0 = vcmask 1044480   ;;  %vm356_vm1 = vcmask 1045504   ;;  %v938_v2 = vmov 65535   ;;  %vm258_vm2 = vcmask 220160   ;;  %s1421_s1 = inlined_call_operand.vmem [shape: bf16[27,4], index: 1, kind: input, shape index: {}]   ;;  %s1422_s2 = inlined_call_operand.vmem [shape: f32[1,4], index: 2, kind: input, shape index: {}]   ;;  %s1423_s0 = inlined_call_operand.vmem [shape: bf16[512,27], index: 0, kind: input, shape index: {}]   ;;  %s1424_s3 = inlined_call_operand.vmem [shape: bf16[512,4], index: 3, kind: output, shape index: {}]  }
   0x1   :  { %v862_v0 = vld [vmem:[%s1421_s1 + $0x8] sm:$0xf]  ;;  %v929_v1 = vld [vmem:[%s1421_s1 + $0x8] sm:$0x30]  ;;  %v357_v3 = vsel %vm355_vm0, 4294967295, %v938_v2  ;;  %v928_v7 = vld [vmem:[%s1421_s1] sm:$0xff] }
   0x2   :  { %v863_v4 = vor.u32 %v929_v1, %v862_v0  ;;  %v358_v5 = vsel %vm356_vm1, %v357_v3, 0  ;;  %v896_v8 = vld [vmem:[%s1423_s0] sm:$0xff]  ;;  %v897_v12 = vld [vmem:[%s1423_s0 + $0x8] sm:$0xff]  ;;  %v898_v16 = vld [vmem:[%s1423_s0 + $0x10] sm:$0xff]  ;;  %vm659_vm3 = vcmask 27648  }
   0x3   :  { %v904_v9 = vld [vmem:[%s1423_s0 + $0x40] sm:$0xff]  ;;  %v905_v13 = vld [vmem:[%s1423_s0 + $0x48] sm:$0xff]  ;;  %v906_v17 = vld [vmem:[%s1423_s0 + $0x50] sm:$0xff] }
   0x4   :  { %v360_v6 = vand.u32 %v863_v4, %v358_v5  ;;  %v912_v10 = vld [vmem:[%s1423_s0 + $0x80] sm:$0xff]  ;;  %v913_v14 = vld [vmem:[%s1423_s0 + $0x88] sm:$0xff]  ;;  %v914_v18 = vld [vmem:[%s1423_s0 + $0x90] sm:$0xff] }
   0x5   :  { %v920_v11 = vld [vmem:[%s1423_s0 + $0xc0] sm:$0xff]  ;;  %v921_v15 = vld [vmem:[%s1423_s0 + $0xc8] sm:$0xff]  ;;  %v922_v19 = vld [vmem:[%s1423_s0 + $0xd0] sm:$0xff] }
   0x6   :  { %368 = vmatpush.bf16.msra.mxu0 %v360_v6  ;;  %930 = vmatpush.bf16.msra.mxu1 %v360_v6  ;;  %v899_v20 = vld [vmem:[%s1423_s0 + $0x18] sm:$0xff]  ;;  %v900_v24 = vld [vmem:[%s1423_s0 + $0x20] sm:$0xff]  ;;  %v901_v28 = vld [vmem:[%s1423_s0 + $0x28] sm:$0xff] }
   0x7   :  { %931 = vmatpush.bf16.msra.mxu2 %v360_v6  ;;  %932 = vmatpush.bf16.msra.mxu3 %v360_v6  ;;  %v907_v21 = vld [vmem:[%s1423_s0 + $0x58] sm:$0xff]  ;;  %v908_v25 = vld [vmem:[%s1423_s0 + $0x60] sm:$0xff]  ;;  %v909_v29 = vld [vmem:[%s1423_s0 + $0x68] sm:$0xff] }
   0x8   :  { %v915_v22 = vld [vmem:[%s1423_s0 + $0x98] sm:$0xff]  ;;  %v916_v26 = vld [vmem:[%s1423_s0 + $0xa0] sm:$0xff]  ;;  %v917_v30 = vld [vmem:[%s1423_s0 + $0xa8] sm:$0xff] }
   0x9   :  { %v923_v23 = vld [vmem:[%s1423_s0 + $0xd8] sm:$0xff]  ;;  %v924_v27 = vld [vmem:[%s1423_s0 + $0xe0] sm:$0xff]  ;;  %v925_v31 = vld [vmem:[%s1423_s0 + $0xe8] sm:$0xff] }
   0xa   :  { %369 = vmatpush.bf16.msra.mxu0 %v928_v7  ;;  %933 = vmatpush.bf16.msra.mxu1 %v928_v7  ;;  %v902_v32 = vld [vmem:[%s1423_s0 + $0x30] sm:$0xff]  ;;  %v903_v36 = vld [vmem:[%s1423_s0 + $0x38] sm:$0xff]  ;;  %v1099_v40 = vld [vmem:[%s1422_s2] ss:$0 sm:$0xff] }
   0xb   :  { %934 = vmatpush.bf16.msra.mxu2 %v928_v7  ;;  %935 = vmatpush.bf16.msra.mxu3 %v928_v7  ;;  %v910_v33 = vld [vmem:[%s1423_s0 + $0x70] sm:$0xff]  ;;  %v911_v37 = vld [vmem:[%s1423_s0 + $0x78] sm:$0xff] }
   0xc   :  { %v918_v34 = vld [vmem:[%s1423_s0 + $0xb0] sm:$0xff]  ;;  %v919_v38 = vld [vmem:[%s1423_s0 + $0xb8] sm:$0xff] }
   0xd   :  { %864 = vmatmul.msk.bf16.vlgmr.msra.gmra.mxu0 %vm258_vm2, %v896_v8  ;;  %872 = vmatmul.msk.bf16.vlgmr.msra.gmra.mxu1 %vm258_vm2, %v904_v9  ;;  %v926_v35 = vld [vmem:[%s1423_s0 + $0xf0] sm:$0xff]  ;;  %v927_v39 = vld [vmem:[%s1423_s0 + $0xf8] sm:$0xff] }
   0xe   :  { %880 = vmatmul.msk.bf16.vlgmr.msra.gmra.mxu2 %vm258_vm2, %v912_v10  ;;  %888 = vmatmul.msk.bf16.vlgmr.msra.gmra.mxu3 %vm258_vm2, %v920_v11 }
  0x1d   :  { %865 = vmatmul.msk.bf16.gmra.mxu0 %vm258_vm2, %v897_v12  ;;  %873 = vmatmul.msk.bf16.gmra.mxu1 %vm258_vm2, %v905_v13 }
  0x1e   :  { %881 = vmatmul.msk.bf16.gmra.mxu2 %vm258_vm2, %v913_v14  ;;  %889 = vmatmul.msk.bf16.gmra.mxu3 %vm258_vm2, %v921_v15 }
  0x2d   :  { %866 = vmatmul.msk.bf16.gmra.mxu0 %vm258_vm2, %v898_v16  ;;  %874 = vmatmul.msk.bf16.gmra.mxu1 %vm258_vm2, %v906_v17 }
  0x2e   :  { %882 = vmatmul.msk.bf16.gmra.mxu2 %vm258_vm2, %v914_v18  ;;  %890 = vmatmul.msk.bf16.gmra.mxu3 %vm258_vm2, %v922_v19 }
  0x3d   :  { %867 = vmatmul.msk.bf16.gmra.mxu0 %vm258_vm2, %v899_v20  ;;  %875 = vmatmul.msk.bf16.gmra.mxu1 %vm258_vm2, %v907_v21 }
  0x3e   :  { %883 = vmatmul.msk.bf16.gmra.mxu2 %vm258_vm2, %v915_v22  ;;  %891 = vmatmul.msk.bf16.gmra.mxu3 %vm258_vm2, %v923_v23 }
  0x4d   :  { %868 = vmatmul.msk.bf16.gmra.mxu0 %vm258_vm2, %v900_v24  ;;  %876 = vmatmul.msk.bf16.gmra.mxu1 %vm258_vm2, %v908_v25 }
  0x4e   :  { %884 = vmatmul.msk.bf16.gmra.mxu2 %vm258_vm2, %v916_v26  ;;  %892 = vmatmul.msk.bf16.gmra.mxu3 %vm258_vm2, %v924_v27 }
  0x5d   :  { %869 = vmatmul.msk.bf16.gmra.mxu0 %vm258_vm2, %v901_v28  ;;  %877 = vmatmul.msk.bf16.gmra.mxu1 %vm258_vm2, %v909_v29 }
  0x5e   :  { %885 = vmatmul.msk.bf16.gmra.mxu2 %vm258_vm2, %v917_v30  ;;  %893 = vmatmul.msk.bf16.gmra.mxu3 %vm258_vm2, %v925_v31 }
  0x6d   :  { %870 = vmatmul.msk.bf16.gmra.mxu0 %vm258_vm2, %v902_v32  ;;  %878 = vmatmul.msk.bf16.gmra.mxu1 %vm258_vm2, %v910_v33 }
  0x6e   :  { %886 = vmatmul.msk.bf16.gmra.mxu2 %vm258_vm2, %v918_v34  ;;  %894 = vmatmul.msk.bf16.gmra.mxu3 %vm258_vm2, %v926_v35 }
  0x7d   :  { %871 = vmatmul.msk.bf16.gmra.mxu0 %vm258_vm2, %v903_v36  ;;  %879 = vmatmul.msk.bf16.gmra.mxu1 %vm258_vm2, %v911_v37 }
  0x7e   :  { %887 = vmatmul.msk.bf16.gmra.mxu2 %vm258_vm2, %v919_v38  ;;  %895 = vmatmul.msk.bf16.gmra.mxu3 %vm258_vm2, %v927_v39 }
  0x8a   :  { %v371_v41 = vpop.f32.mrf.mxu0  ;;  %v411_v42 = vpop.f32.mrf.mxu1 }
  0x8b   :  { %v372_v43 = vadd.f32 %v1099_v40, %v371_v41  ;;  %v412_v44 = vadd.f32 %v1099_v40, %v411_v42 }
  0x8d   :  { %v531_v45 = vmax.f32 %v372_v43, 0.0  ;;  %v547_v46 = vmax.f32 %v412_v44, 0.0 }
  0x8f   :  { %v595_v47 = vpack.c.bf16 %v531_v45, %v531_v45  ;;  %v611_v48 = vpack.c.bf16 %v547_v46, %v547_v46 }
  0x91   :  { %660 = vst.msk [vmem:[%s1424_s3] sm:$0xf] %vm659_vm3, %v595_v47  ;;  %v451_v49 = vpop.f32.mrf.mxu2  ;;  %v491_v50 = vpop.f32.mrf.mxu3 }
  0x92   :  { %676 = vst.msk [vmem:[%s1424_s3 + $0x40] sm:$0xf] %vm659_vm3, %v611_v48  ;;  %v452_v51 = vadd.f32 %v1099_v40, %v451_v49  ;;  %v492_v52 = vadd.f32 %v1099_v40, %v491_v50  ;;  %v373_v53 = vpop.f32.mrf.mxu0  ;;  %v413_v54 = vpop.f32.mrf.mxu1 }
  0x93   :  { %v374_v55 = vadd.f32 %v1099_v40, %v373_v53  ;;  %v414_v56 = vadd.f32 %v1099_v40, %v413_v54 }
  0x94   :  { %v563_v57 = vmax.f32 %v452_v51, 0.0  ;;  %v579_v58 = vmax.f32 %v492_v52, 0.0 }
  0x95   :  { %v532_v59 = vmax.f32 %v374_v55, 0.0  ;;  %v548_v60 = vmax.f32 %v414_v56, 0.0 }
  0x96   :  { %v627_v61 = vpack.c.bf16 %v563_v57, %v563_v57  ;;  %v643_v62 = vpack.c.bf16 %v579_v58, %v579_v58 }
  0x97   :  { %v596_v63 = vpack.c.bf16 %v532_v59, %v532_v59  ;;  %v612_v0 = vpack.c.bf16 %v548_v60, %v548_v60 }
  0x98   :  { %692 = vst.msk [vmem:[%s1424_s3 + $0x80] sm:$0xf] %vm659_vm3, %v627_v61 }
  0x99   :  { %708 = vst.msk [vmem:[%s1424_s3 + $0xc0] sm:$0xf] %vm659_vm3, %v643_v62  ;;  %v453_v1 = vpop.f32.mrf.mxu2  ;;  %v493_v2 = vpop.f32.mrf.mxu3 }
  0x9a   :  { %661 = vst.msk [vmem:[%s1424_s3 + $0x4] sm:$0xf] %vm659_vm3, %v596_v63  ;;  %v454_v3 = vadd.f32 %v1099_v40, %v453_v1  ;;  %v494_v4 = vadd.f32 %v1099_v40, %v493_v2  ;;  %v376_v5 = vpop.f32.mrf.mxu0  ;;  %v416_v6 = vpop.f32.mrf.mxu1 }
  0x9b   :  { %677 = vst.msk [vmem:[%s1424_s3 + $0x44] sm:$0xf] %vm659_vm3, %v612_v0  ;;  %v377_v7 = vadd.f32 %v1099_v40, %v376_v5  ;;  %v417_v8 = vadd.f32 %v1099_v40, %v416_v6 }
  0x9c   :  { %v564_v9 = vmax.f32 %v454_v3, 0.0  ;;  %v580_v10 = vmax.f32 %v494_v4, 0.0 }
  0x9d   :  { %v533_v11 = vmax.f32 %v377_v7, 0.0  ;;  %v549_v12 = vmax.f32 %v417_v8, 0.0 }
  0x9e   :  { %v628_v13 = vpack.c.bf16 %v564_v9, %v564_v9  ;;  %v644_v14 = vpack.c.bf16 %v580_v10, %v580_v10 }
  0x9f   :  { %v597_v15 = vpack.c.bf16 %v533_v11, %v533_v11  ;;  %v613_v16 = vpack.c.bf16 %v549_v12, %v549_v12 }
  0xa0   :  { %693 = vst.msk [vmem:[%s1424_s3 + $0x84] sm:$0xf] %vm659_vm3, %v628_v13 }
  0xa1   :  { %709 = vst.msk [vmem:[%s1424_s3 + $0xc4] sm:$0xf] %vm659_vm3, %v644_v14  ;;  %v456_v17 = vpop.f32.mrf.mxu2  ;;  %v496_v18 = vpop.f32.mrf.mxu3 }
  0xa2   :  { %662 = vst.msk [vmem:[%s1424_s3 + $0x8] sm:$0xf] %vm659_vm3, %v597_v15  ;;  %v457_v19 = vadd.f32 %v1099_v40, %v456_v17  ;;  %v497_v20 = vadd.f32 %v1099_v40, %v496_v18  ;;  %v378_v21 = vpop.f32.mrf.mxu0  ;;  %v418_v22 = vpop.f32.mrf.mxu1 }
  0xa3   :  { %678 = vst.msk [vmem:[%s1424_s3 + $0x48] sm:$0xf] %vm659_vm3, %v613_v16  ;;  %v379_v23 = vadd.f32 %v1099_v40, %v378_v21  ;;  %v419_v24 = vadd.f32 %v1099_v40, %v418_v22 }
  0xa4   :  { %v565_v25 = vmax.f32 %v457_v19, 0.0  ;;  %v581_v26 = vmax.f32 %v497_v20, 0.0 }
  0xa5   :  { %v534_v27 = vmax.f32 %v379_v23, 0.0  ;;  %v550_v28 = vmax.f32 %v419_v24, 0.0 }
  0xa6   :  { %v629_v29 = vpack.c.bf16 %v565_v25, %v565_v25  ;;  %v645_v30 = vpack.c.bf16 %v581_v26, %v581_v26 }
  0xa7   :  { %v598_v31 = vpack.c.bf16 %v534_v27, %v534_v27  ;;  %v614_v32 = vpack.c.bf16 %v550_v28, %v550_v28 }
  0xa8   :  { %694 = vst.msk [vmem:[%s1424_s3 + $0x88] sm:$0xf] %vm659_vm3, %v629_v29 }
  0xa9   :  { %710 = vst.msk [vmem:[%s1424_s3 + $0xc8] sm:$0xf] %vm659_vm3, %v645_v30  ;;  %v458_v33 = vpop.f32.mrf.mxu2  ;;  %v498_v34 = vpop.f32.mrf.mxu3 }
  0xaa   :  { %663 = vst.msk [vmem:[%s1424_s3 + $0xc] sm:$0xf] %vm659_vm3, %v598_v31  ;;  %v459_v35 = vadd.f32 %v1099_v40, %v458_v33  ;;  %v499_v36 = vadd.f32 %v1099_v40, %v498_v34  ;;  %v381_v37 = vpop.f32.mrf.mxu0  ;;  %v421_v38 = vpop.f32.mrf.mxu1 }
  0xab   :  { %679 = vst.msk [vmem:[%s1424_s3 + $0x4c] sm:$0xf] %vm659_vm3, %v614_v32  ;;  %v382_v39 = vadd.f32 %v1099_v40, %v381_v37  ;;  %v422_v41 = vadd.f32 %v1099_v40, %v421_v38 }
  0xac   :  { %v566_v42 = vmax.f32 %v459_v35, 0.0  ;;  %v582_v43 = vmax.f32 %v499_v36, 0.0 }
  0xad   :  { %v535_v44 = vmax.f32 %v382_v39, 0.0  ;;  %v551_v45 = vmax.f32 %v422_v41, 0.0 }
  0xae   :  { %v630_v46 = vpack.c.bf16 %v566_v42, %v566_v42  ;;  %v646_v47 = vpack.c.bf16 %v582_v43, %v582_v43 }
  0xaf   :  { %v599_v48 = vpack.c.bf16 %v535_v44, %v535_v44  ;;  %v615_v49 = vpack.c.bf16 %v551_v45, %v551_v45 }
  0xb0   :  { %695 = vst.msk [vmem:[%s1424_s3 + $0x8c] sm:$0xf] %vm659_vm3, %v630_v46 }
  0xb1   :  { %711 = vst.msk [vmem:[%s1424_s3 + $0xcc] sm:$0xf] %vm659_vm3, %v646_v47  ;;  %v461_v50 = vpop.f32.mrf.mxu2  ;;  %v501_v51 = vpop.f32.mrf.mxu3 }
  0xb2   :  { %664 = vst.msk [vmem:[%s1424_s3 + $0x10] sm:$0xf] %vm659_vm3, %v599_v48  ;;  %v462_v52 = vadd.f32 %v1099_v40, %v461_v50  ;;  %v502_v53 = vadd.f32 %v1099_v40, %v501_v51  ;;  %v383_v54 = vpop.f32.mrf.mxu0  ;;  %v423_v55 = vpop.f32.mrf.mxu1 }
  0xb3   :  { %680 = vst.msk [vmem:[%s1424_s3 + $0x50] sm:$0xf] %vm659_vm3, %v615_v49  ;;  %v384_v56 = vadd.f32 %v1099_v40, %v383_v54  ;;  %v424_v57 = vadd.f32 %v1099_v40, %v423_v55 }
  0xb4   :  { %v567_v58 = vmax.f32 %v462_v52, 0.0  ;;  %v583_v59 = vmax.f32 %v502_v53, 0.0 }
  0xb5   :  { %v536_v60 = vmax.f32 %v384_v56, 0.0  ;;  %v552_v61 = vmax.f32 %v424_v57, 0.0 }
  0xb6   :  { %v631_v62 = vpack.c.bf16 %v567_v58, %v567_v58  ;;  %v647_v63 = vpack.c.bf16 %v583_v59, %v583_v59 }
  0xb7   :  { %v600_v0 = vpack.c.bf16 %v536_v60, %v536_v60  ;;  %v616_v1 = vpack.c.bf16 %v552_v61, %v552_v61 }
  0xb8   :  { %696 = vst.msk [vmem:[%s1424_s3 + $0x90] sm:$0xf] %vm659_vm3, %v631_v62 }
  0xb9   :  { %712 = vst.msk [vmem:[%s1424_s3 + $0xd0] sm:$0xf] %vm659_vm3, %v647_v63  ;;  %v463_v2 = vpop.f32.mrf.mxu2  ;;  %v503_v3 = vpop.f32.mrf.mxu3 }
  0xba   :  { %665 = vst.msk [vmem:[%s1424_s3 + $0x14] sm:$0xf] %vm659_vm3, %v600_v0  ;;  %v464_v4 = vadd.f32 %v1099_v40, %v463_v2  ;;  %v504_v5 = vadd.f32 %v1099_v40, %v503_v3  ;;  %v386_v6 = vpop.f32.mrf.mxu0  ;;  %v426_v7 = vpop.f32.mrf.mxu1 }
  0xbb   :  { %681 = vst.msk [vmem:[%s1424_s3 + $0x54] sm:$0xf] %vm659_vm3, %v616_v1  ;;  %v387_v8 = vadd.f32 %v1099_v40, %v386_v6  ;;  %v427_v9 = vadd.f32 %v1099_v40, %v426_v7 }
  0xbc   :  { %v568_v10 = vmax.f32 %v464_v4, 0.0  ;;  %v584_v11 = vmax.f32 %v504_v5, 0.0 }
  0xbd   :  { %v537_v12 = vmax.f32 %v387_v8, 0.0  ;;  %v553_v13 = vmax.f32 %v427_v9, 0.0 }
  0xbe   :  { %v632_v14 = vpack.c.bf16 %v568_v10, %v568_v10  ;;  %v648_v15 = vpack.c.bf16 %v584_v11, %v584_v11 }
  0xbf   :  { %v601_v16 = vpack.c.bf16 %v537_v12, %v537_v12  ;;  %v617_v17 = vpack.c.bf16 %v553_v13, %v553_v13 }
  0xc0   :  { %697 = vst.msk [vmem:[%s1424_s3 + $0x94] sm:$0xf] %vm659_vm3, %v632_v14 }
  0xc1   :  { %713 = vst.msk [vmem:[%s1424_s3 + $0xd4] sm:$0xf] %vm659_vm3, %v648_v15  ;;  %v466_v18 = vpop.f32.mrf.mxu2  ;;  %v506_v19 = vpop.f32.mrf.mxu3 }
  0xc2   :  { %666 = vst.msk [vmem:[%s1424_s3 + $0x18] sm:$0xf] %vm659_vm3, %v601_v16  ;;  %v467_v20 = vadd.f32 %v1099_v40, %v466_v18  ;;  %v507_v21 = vadd.f32 %v1099_v40, %v506_v19  ;;  %v388_v22 = vpop.f32.mrf.mxu0  ;;  %v428_v23 = vpop.f32.mrf.mxu1 }
  0xc3   :  { %682 = vst.msk [vmem:[%s1424_s3 + $0x58] sm:$0xf] %vm659_vm3, %v617_v17  ;;  %v389_v24 = vadd.f32 %v1099_v40, %v388_v22  ;;  %v429_v25 = vadd.f32 %v1099_v40, %v428_v23 }
  0xc4   :  { %v569_v26 = vmax.f32 %v467_v20, 0.0  ;;  %v585_v27 = vmax.f32 %v507_v21, 0.0 }
  0xc5   :  { %v538_v28 = vmax.f32 %v389_v24, 0.0  ;;  %v554_v29 = vmax.f32 %v429_v25, 0.0 }
  0xc6   :  { %v633_v30 = vpack.c.bf16 %v569_v26, %v569_v26  ;;  %v649_v31 = vpack.c.bf16 %v585_v27, %v585_v27 }
  0xc7   :  { %v602_v32 = vpack.c.bf16 %v538_v28, %v538_v28  ;;  %v618_v33 = vpack.c.bf16 %v554_v29, %v554_v29 }
  0xc8   :  { %698 = vst.msk [vmem:[%s1424_s3 + $0x98] sm:$0xf] %vm659_vm3, %v633_v30 }
  0xc9   :  { %714 = vst.msk [vmem:[%s1424_s3 + $0xd8] sm:$0xf] %vm659_vm3, %v649_v31  ;;  %v468_v34 = vpop.f32.mrf.mxu2  ;;  %v508_v35 = vpop.f32.mrf.mxu3 }
  0xca   :  { %667 = vst.msk [vmem:[%s1424_s3 + $0x1c] sm:$0xf] %vm659_vm3, %v602_v32  ;;  %v469_v36 = vadd.f32 %v1099_v40, %v468_v34  ;;  %v509_v37 = vadd.f32 %v1099_v40, %v508_v35  ;;  %v391_v38 = vpop.f32.mrf.mxu0  ;;  %v431_v39 = vpop.f32.mrf.mxu1 }
  0xcb   :  { %683 = vst.msk [vmem:[%s1424_s3 + $0x5c] sm:$0xf] %vm659_vm3, %v618_v33  ;;  %v392_v41 = vadd.f32 %v1099_v40, %v391_v38  ;;  %v432_v42 = vadd.f32 %v1099_v40, %v431_v39 }
  0xcc   :  { %v570_v43 = vmax.f32 %v469_v36, 0.0  ;;  %v586_v44 = vmax.f32 %v509_v37, 0.0 }
  0xcd   :  { %v539_v45 = vmax.f32 %v392_v41, 0.0  ;;  %v555_v46 = vmax.f32 %v432_v42, 0.0 }
  0xce   :  { %v634_v47 = vpack.c.bf16 %v570_v43, %v570_v43  ;;  %v650_v48 = vpack.c.bf16 %v586_v44, %v586_v44 }
  0xcf   :  { %v603_v49 = vpack.c.bf16 %v539_v45, %v539_v45  ;;  %v619_v50 = vpack.c.bf16 %v555_v46, %v555_v46 }
  0xd0   :  { %699 = vst.msk [vmem:[%s1424_s3 + $0x9c] sm:$0xf] %vm659_vm3, %v634_v47 }
  0xd1   :  { %715 = vst.msk [vmem:[%s1424_s3 + $0xdc] sm:$0xf] %vm659_vm3, %v650_v48  ;;  %v471_v51 = vpop.f32.mrf.mxu2  ;;  %v511_v52 = vpop.f32.mrf.mxu3 }
  0xd2   :  { %668 = vst.msk [vmem:[%s1424_s3 + $0x20] sm:$0xf] %vm659_vm3, %v603_v49  ;;  %v472_v53 = vadd.f32 %v1099_v40, %v471_v51  ;;  %v512_v54 = vadd.f32 %v1099_v40, %v511_v52  ;;  %v393_v55 = vpop.f32.mrf.mxu0  ;;  %v433_v56 = vpop.f32.mrf.mxu1 }
  0xd3   :  { %684 = vst.msk [vmem:[%s1424_s3 + $0x60] sm:$0xf] %vm659_vm3, %v619_v50  ;;  %v394_v57 = vadd.f32 %v1099_v40, %v393_v55  ;;  %v434_v58 = vadd.f32 %v1099_v40, %v433_v56 }
  0xd4   :  { %v571_v59 = vmax.f32 %v472_v53, 0.0  ;;  %v587_v60 = vmax.f32 %v512_v54, 0.0 }
  0xd5   :  { %v540_v61 = vmax.f32 %v394_v57, 0.0  ;;  %v556_v62 = vmax.f32 %v434_v58, 0.0 }
  0xd6   :  { %v635_v63 = vpack.c.bf16 %v571_v59, %v571_v59  ;;  %v651_v0 = vpack.c.bf16 %v587_v60, %v587_v60 }
  0xd7   :  { %v604_v1 = vpack.c.bf16 %v540_v61, %v540_v61  ;;  %v620_v2 = vpack.c.bf16 %v556_v62, %v556_v62 }
  0xd8   :  { %700 = vst.msk [vmem:[%s1424_s3 + $0xa0] sm:$0xf] %vm659_vm3, %v635_v63 }
  0xd9   :  { %716 = vst.msk [vmem:[%s1424_s3 + $0xe0] sm:$0xf] %vm659_vm3, %v651_v0  ;;  %v473_v3 = vpop.f32.mrf.mxu2  ;;  %v513_v4 = vpop.f32.mrf.mxu3 }
  0xda   :  { %669 = vst.msk [vmem:[%s1424_s3 + $0x24] sm:$0xf] %vm659_vm3, %v604_v1  ;;  %v474_v5 = vadd.f32 %v1099_v40, %v473_v3  ;;  %v514_v6 = vadd.f32 %v1099_v40, %v513_v4  ;;  %v396_v7 = vpop.f32.mrf.mxu0  ;;  %v436_v8 = vpop.f32.mrf.mxu1 }
  0xdb   :  { %685 = vst.msk [vmem:[%s1424_s3 + $0x64] sm:$0xf] %vm659_vm3, %v620_v2  ;;  %v397_v9 = vadd.f32 %v1099_v40, %v396_v7  ;;  %v437_v10 = vadd.f32 %v1099_v40, %v436_v8 }
  0xdc   :  { %v572_v11 = vmax.f32 %v474_v5, 0.0  ;;  %v588_v12 = vmax.f32 %v514_v6, 0.0 }
  0xdd   :  { %v541_v13 = vmax.f32 %v397_v9, 0.0  ;;  %v557_v14 = vmax.f32 %v437_v10, 0.0 }
  0xde   :  { %v636_v15 = vpack.c.bf16 %v572_v11, %v572_v11  ;;  %v652_v16 = vpack.c.bf16 %v588_v12, %v588_v12 }
  0xdf   :  { %v605_v17 = vpack.c.bf16 %v541_v13, %v541_v13  ;;  %v621_v18 = vpack.c.bf16 %v557_v14, %v557_v14 }
  0xe0   :  { %701 = vst.msk [vmem:[%s1424_s3 + $0xa4] sm:$0xf] %vm659_vm3, %v636_v15 }
  0xe1   :  { %717 = vst.msk [vmem:[%s1424_s3 + $0xe4] sm:$0xf] %vm659_vm3, %v652_v16  ;;  %v476_v19 = vpop.f32.mrf.mxu2  ;;  %v516_v20 = vpop.f32.mrf.mxu3 }
  0xe2   :  { %670 = vst.msk [vmem:[%s1424_s3 + $0x28] sm:$0xf] %vm659_vm3, %v605_v17  ;;  %v477_v21 = vadd.f32 %v1099_v40, %v476_v19  ;;  %v517_v22 = vadd.f32 %v1099_v40, %v516_v20  ;;  %v398_v23 = vpop.f32.mrf.mxu0  ;;  %v438_v24 = vpop.f32.mrf.mxu1 }
  0xe3   :  { %686 = vst.msk [vmem:[%s1424_s3 + $0x68] sm:$0xf] %vm659_vm3, %v621_v18  ;;  %v399_v25 = vadd.f32 %v1099_v40, %v398_v23  ;;  %v439_v26 = vadd.f32 %v1099_v40, %v438_v24 }
  0xe4   :  { %v573_v27 = vmax.f32 %v477_v21, 0.0  ;;  %v589_v28 = vmax.f32 %v517_v22, 0.0 }
  0xe5   :  { %v542_v29 = vmax.f32 %v399_v25, 0.0  ;;  %v558_v30 = vmax.f32 %v439_v26, 0.0 }
  0xe6   :  { %v637_v31 = vpack.c.bf16 %v573_v27, %v573_v27  ;;  %v653_v32 = vpack.c.bf16 %v589_v28, %v589_v28 }
  0xe7   :  { %v606_v33 = vpack.c.bf16 %v542_v29, %v542_v29  ;;  %v622_v34 = vpack.c.bf16 %v558_v30, %v558_v30 }
  0xe8   :  { %702 = vst.msk [vmem:[%s1424_s3 + $0xa8] sm:$0xf] %vm659_vm3, %v637_v31 }
  0xe9   :  { %718 = vst.msk [vmem:[%s1424_s3 + $0xe8] sm:$0xf] %vm659_vm3, %v653_v32  ;;  %v478_v35 = vpop.f32.mrf.mxu2  ;;  %v518_v36 = vpop.f32.mrf.mxu3 }
  0xea   :  { %671 = vst.msk [vmem:[%s1424_s3 + $0x2c] sm:$0xf] %vm659_vm3, %v606_v33  ;;  %v479_v37 = vadd.f32 %v1099_v40, %v478_v35  ;;  %v519_v38 = vadd.f32 %v1099_v40, %v518_v36  ;;  %v401_v39 = vpop.f32.mrf.mxu0  ;;  %v441_v41 = vpop.f32.mrf.mxu1 }
  0xeb   :  { %687 = vst.msk [vmem:[%s1424_s3 + $0x6c] sm:$0xf] %vm659_vm3, %v622_v34  ;;  %v402_v42 = vadd.f32 %v1099_v40, %v401_v39  ;;  %v442_v43 = vadd.f32 %v1099_v40, %v441_v41 }
  0xec   :  { %v574_v44 = vmax.f32 %v479_v37, 0.0  ;;  %v590_v45 = vmax.f32 %v519_v38, 0.0 }
  0xed   :  { %v543_v46 = vmax.f32 %v402_v42, 0.0  ;;  %v559_v47 = vmax.f32 %v442_v43, 0.0 }
  0xee   :  { %v638_v48 = vpack.c.bf16 %v574_v44, %v574_v44  ;;  %v654_v49 = vpack.c.bf16 %v590_v45, %v590_v45 }
  0xef   :  { %v607_v50 = vpack.c.bf16 %v543_v46, %v543_v46  ;;  %v623_v51 = vpack.c.bf16 %v559_v47, %v559_v47 }
  0xf0   :  { %703 = vst.msk [vmem:[%s1424_s3 + $0xac] sm:$0xf] %vm659_vm3, %v638_v48 }
  0xf1   :  { %719 = vst.msk [vmem:[%s1424_s3 + $0xec] sm:$0xf] %vm659_vm3, %v654_v49  ;;  %v481_v52 = vpop.f32.mrf.mxu2  ;;  %v521_v53 = vpop.f32.mrf.mxu3 }
  0xf2   :  { %672 = vst.msk [vmem:[%s1424_s3 + $0x30] sm:$0xf] %vm659_vm3, %v607_v50  ;;  %v482_v54 = vadd.f32 %v1099_v40, %v481_v52  ;;  %v522_v55 = vadd.f32 %v1099_v40, %v521_v53  ;;  %v403_v56 = vpop.f32.mrf.mxu0  ;;  %v443_v57 = vpop.f32.mrf.mxu1 }
  0xf3   :  { %688 = vst.msk [vmem:[%s1424_s3 + $0x70] sm:$0xf] %vm659_vm3, %v623_v51  ;;  %v404_v58 = vadd.f32 %v1099_v40, %v403_v56  ;;  %v444_v59 = vadd.f32 %v1099_v40, %v443_v57 }
  0xf4   :  { %v575_v60 = vmax.f32 %v482_v54, 0.0  ;;  %v591_v61 = vmax.f32 %v522_v55, 0.0 }
  0xf5   :  { %v544_v62 = vmax.f32 %v404_v58, 0.0  ;;  %v560_v63 = vmax.f32 %v444_v59, 0.0 }
  0xf6   :  { %v639_v0 = vpack.c.bf16 %v575_v60, %v575_v60  ;;  %v655_v1 = vpack.c.bf16 %v591_v61, %v591_v61 }
  0xf7   :  { %v608_v2 = vpack.c.bf16 %v544_v62, %v544_v62  ;;  %v624_v3 = vpack.c.bf16 %v560_v63, %v560_v63 }
  0xf8   :  { %704 = vst.msk [vmem:[%s1424_s3 + $0xb0] sm:$0xf] %vm659_vm3, %v639_v0 }
  0xf9   :  { %720 = vst.msk [vmem:[%s1424_s3 + $0xf0] sm:$0xf] %vm659_vm3, %v655_v1  ;;  %v483_v4 = vpop.f32.mrf.mxu2  ;;  %v523_v5 = vpop.f32.mrf.mxu3 }
  0xfa   :  { %673 = vst.msk [vmem:[%s1424_s3 + $0x34] sm:$0xf] %vm659_vm3, %v608_v2  ;;  %v484_v6 = vadd.f32 %v1099_v40, %v483_v4  ;;  %v524_v7 = vadd.f32 %v1099_v40, %v523_v5  ;;  %v406_v8 = vpop.f32.mrf.mxu0  ;;  %v446_v9 = vpop.f32.mrf.mxu1 }
  0xfb   :  { %689 = vst.msk [vmem:[%s1424_s3 + $0x74] sm:$0xf] %vm659_vm3, %v624_v3  ;;  %v407_v10 = vadd.f32 %v1099_v40, %v406_v8  ;;  %v447_v11 = vadd.f32 %v1099_v40, %v446_v9 }
  0xfc   :  { %v576_v12 = vmax.f32 %v484_v6, 0.0  ;;  %v592_v13 = vmax.f32 %v524_v7, 0.0 }
  0xfd   :  { %v545_v14 = vmax.f32 %v407_v10, 0.0  ;;  %v561_v15 = vmax.f32 %v447_v11, 0.0 }
  0xfe   :  { %v640_v16 = vpack.c.bf16 %v576_v12, %v576_v12  ;;  %v656_v17 = vpack.c.bf16 %v592_v13, %v592_v13 }
  0xff   :  { %v609_v18 = vpack.c.bf16 %v545_v14, %v545_v14  ;;  %v625_v19 = vpack.c.bf16 %v561_v15, %v561_v15 }
 0x100   :  { %705 = vst.msk [vmem:[%s1424_s3 + $0xb4] sm:$0xf] %vm659_vm3, %v640_v16 }
 0x101   :  { %721 = vst.msk [vmem:[%s1424_s3 + $0xf4] sm:$0xf] %vm659_vm3, %v656_v17  ;;  %v486_v20 = vpop.f32.mrf.mxu2  ;;  %v526_v21 = vpop.f32.mrf.mxu3 }
 0x102   :  { %674 = vst.msk [vmem:[%s1424_s3 + $0x38] sm:$0xf] %vm659_vm3, %v609_v18  ;;  %v487_v22 = vadd.f32 %v1099_v40, %v486_v20  ;;  %v527_v23 = vadd.f32 %v1099_v40, %v526_v21  ;;  %v408_v24 = vpop.f32.mrf.mxu0  ;;  %v448_v25 = vpop.f32.mrf.mxu1 }
 0x103   :  { %690 = vst.msk [vmem:[%s1424_s3 + $0x78] sm:$0xf] %vm659_vm3, %v625_v19  ;;  %v409_v26 = vadd.f32 %v1099_v40, %v408_v24  ;;  %v449_v27 = vadd.f32 %v1099_v40, %v448_v25 }
 0x104   :  { %v577_v28 = vmax.f32 %v487_v22, 0.0  ;;  %v593_v29 = vmax.f32 %v527_v23, 0.0 }
 0x105   :  { %v546_v30 = vmax.f32 %v409_v26, 0.0  ;;  %v562_v31 = vmax.f32 %v449_v27, 0.0 }
 0x106   :  { %v641_v32 = vpack.c.bf16 %v577_v28, %v577_v28  ;;  %v657_v33 = vpack.c.bf16 %v593_v29, %v593_v29 }
 0x107   :  { %v610_v34 = vpack.c.bf16 %v546_v30, %v546_v30  ;;  %v626_v35 = vpack.c.bf16 %v562_v31, %v562_v31 }
 0x108   :  { %706 = vst.msk [vmem:[%s1424_s3 + $0xb8] sm:$0xf] %vm659_vm3, %v641_v32 }
 0x109   :  { %722 = vst.msk [vmem:[%s1424_s3 + $0xf8] sm:$0xf] %vm659_vm3, %v657_v33  ;;  %v488_v36 = vpop.f32.mrf.mxu2  ;;  %v528_v37 = vpop.f32.mrf.mxu3 }
 0x10a   :  { %675 = vst.msk [vmem:[%s1424_s3 + $0x3c] sm:$0xf] %vm659_vm3, %v610_v34  ;;  %v489_v38 = vadd.f32 %v1099_v40, %v488_v36  ;;  %v529_v39 = vadd.f32 %v1099_v40, %v528_v37 }
 0x10b   :  { %691 = vst.msk [vmem:[%s1424_s3 + $0x7c] sm:$0xf] %vm659_vm3, %v626_v35 }
 0x10c   :  { %v578_v41 = vmax.f32 %v489_v38, 0.0  ;;  %v594_v42 = vmax.f32 %v529_v39, 0.0 }
 0x10e   :  { %v642_v43 = vpack.c.bf16 %v578_v41, %v578_v41  ;;  %v658_v44 = vpack.c.bf16 %v594_v42, %v594_v42 }
 0x110   :  { %707 = vst.msk [vmem:[%s1424_s3 + $0xbc] sm:$0xf] %vm659_vm3, %v642_v43 }
 0x111   :  { %723 = vst.msk [vmem:[%s1424_s3 + $0xfc] sm:$0xf] %vm659_vm3, %v658_v44 }

</bundles_post_ra>
